<compile_context>
chip_gen: v5e
topology: v5e:2x2
jax: 0.10.0
libtpu: 0.0.40
codegen_flags: <defaults>
</compile_context>

<pallas_src>
import functools
import math

import jax
import jax.numpy as jnp
from jax.experimental import pallas as pl
from jax.experimental.pallas import tpu as pltpu

LN_EPS = 1e-5


# ---------------------------------------------------------------------------
# Kernel
# ---------------------------------------------------------------------------
def _patch_merging_kernel(x_ref, g_ref, b_ref, w_ref, o_ref):
    # x_ref: (tg, 2, Wo, 2C)   [:, 0, w] -> [x0 | x2] channels (even input row)
    #                          [:, 1, w] -> [x1 | x3] channels (odd  input row)
    # g_ref, b_ref: (2, 2C)    LayerNorm gamma/beta permuted to the same order
    # w_ref: (2, 2C, Cout)     reduction-weight halves (bf16), permuted likewise
    # o_ref: (tg*Wo, Cout)
    tg, _, wo, k2 = x_ref.shape
    m = tg * wo
    inv_k4 = 1.0 / float(2 * k2)

    def half(t):
        # One (tg, Wo, 2C) f32 view of one input-row parity; single load+cast
        # per use (no materialized full-block copy).
        return x_ref[:, t, :, :].astype(jnp.float32)

    # Pass 1: mean over the merged 4C channels (one f32 half live at a time).
    s = jnp.sum(half(0), axis=-1, keepdims=True)
    s = s + jnp.sum(half(1), axis=-1, keepdims=True)
    mean = s * inv_k4                                      # (tg, Wo, 1)

    # Pass 2: centered variance, again half by half.
    d = half(0) - mean
    v = jnp.sum(d * d, axis=-1, keepdims=True)
    d = half(1) - mean
    v = v + jnp.sum(d * d, axis=-1, keepdims=True)
    rstd = jax.lax.rsqrt(v * inv_k4 + LN_EPS)              # (tg, Wo, 1)

    g = g_ref[...].astype(jnp.float32).reshape(2, 1, 1, k2)
    b = b_ref[...].astype(jnp.float32).reshape(2, 1, 1, k2)

    # Pass 3: normalize + affine + reduce, one half at a time, so at most one
    # (m, 2C) f32 temporary is live together with the f32 accumulator.
    # bf16 MXU inputs, f32 accumulation.
    nt = (((half(0) - mean) * rstd) * g[0] + b[0]).astype(jnp.bfloat16).reshape(m, k2)
    acc = jnp.dot(nt, w_ref[0], preferred_element_type=jnp.float32)
    nb = (((half(1) - mean) * rstd) * g[1] + b[1]).astype(jnp.bfloat16).reshape(m, k2)
    acc = acc + jnp.dot(nb, w_ref[1], preferred_element_type=jnp.float32)
    o_ref[...] = acc.astype(o_ref.dtype)


# ---------------------------------------------------------------------------
# Tiling / VMEM budgeting helpers
# ---------------------------------------------------------------------------
def _round_up(x, m):
    return ((x + m - 1) // m) * m


def _vmem_capacity_bytes():
    try:
        return int(pltpu.get_tpu_info().vmem_capacity_bytes)
    except Exception:
        return 64 << 20  # conservative fallback (v7x per-TC VMEM)


def _footprint_bytes(tg, Wo, C, x_itemsize, out_itemsize):
    """Generous per-grid-step VMEM footprint estimate."""
    m = tg * Wo
    in_blk = m * 4 * C * x_itemsize * 2          # double-buffered activation block
    out_blk = m * 2 * C * out_itemsize * 2       # double-buffered output block
    temps = m * 2 * C * 16                       # f32 half + bf16 half + f32 acc + slack
    consts = 2 * (2 * C) * (2 * C) * 2 * 2 + 4 * (2 * C) * 4 * 2  # weight + gamma/beta
    return in_blk + out_blk + temps + consts


def _derive_tiling(G, Wo, C, x_itemsize, out_itemsize):
    """Byte-targeted, generation-aware tile of `tg` output-row groups."""
    sub = 16 if out_itemsize == 2 else 8                 # sublane packing of the output
    m_align = sub // math.gcd(Wo, sub)                   # tg*Wo must be sublane aligned

    vmem_cap = _vmem_capacity_bytes()
    budget = int(vmem_cap * 0.70)                        # headroom under physical VMEM

    # Target ~4 MiB per activation input buffer (measured 2-8 MiB sweet spot).
    bytes_per_group_in = Wo * 4 * C * x_itemsize
    tg = max(m_align, _round_up((4 << 20) // max(bytes_per_group_in, 1), m_align))

    # Shrink until the whole per-step footprint fits this chip's budget
    # (matters for large C and on v7x's 64 MiB VMEM).
    while tg > m_align and _footprint_bytes(tg, Wo, C, x_itemsize, out_itemsize) > budget:
        tg -= m_align

    # Keep >= 2 grid steps whenever possible so both v7x TensorCores get work.
    tg = min(tg, _round_up(-(-G // 2), m_align))
    if tg >= G:
        tg = G  # single block: block dims == full array dims -> always legal

    fp = _footprint_bytes(tg, Wo, C, x_itemsize, out_itemsize)
    vmem_limit = min(int(vmem_cap * 0.95), max(32 << 20, int(fp * 1.3)))
    return tg, int(vmem_limit)


def _const_block_spec(block_shape):
    """BlockSpec for a grid-invariant operand; single-buffered when supported."""
    index_map = lambda i: (0,) * len(block_shape)
    try:
        return pl.BlockSpec(block_shape, index_map, pipeline_mode=pl.Buffered(1))
    except (TypeError, AttributeError):
        return pl.BlockSpec(block_shape, index_map)


# ---------------------------------------------------------------------------
# Parameter preparation (init-time; do NOT call per forward step)
# ---------------------------------------------------------------------------
def prepare_patch_merging_params(gamma, beta, w_reduction):
    """Permute LN params / weight rows into the kernel's [x0|x2] / [x1|x3] order.

    gamma, beta: [4*C]; w_reduction: [2*C, 4*C] (nn.Linear weight, no bias).
    Returns g2 (2, 2C) f32, b2 (2, 2C) f32, w2 (2, 2C, 2C) bf16.
    """
    C4 = gamma.shape[0]
    C = C4 // 4
    Cout = w_reduction.shape[0]
    g4 = jnp.asarray(gamma, jnp.float32).reshape(4, C)
    b4 = jnp.asarray(beta, jnp.float32).reshape(4, C)
    g2 = jnp.stack([jnp.concatenate([g4[0], g4[2]]),
                    jnp.concatenate([g4[1], g4[3]])])
    b2 = jnp.stack([jnp.concatenate([b4[0], b4[2]]),
                    jnp.concatenate([b4[1], b4[3]])])
    w_t = jnp.asarray(w_reduction, jnp.float32).T.reshape(4, C, Cout)
    w2 = jnp.stack([jnp.concatenate([w_t[0], w_t[2]], axis=0),
                    jnp.concatenate([w_t[1], w_t[3]], axis=0)]).astype(jnp.bfloat16)
    return g2, b2, w2


# ---------------------------------------------------------------------------
# Forward
# ---------------------------------------------------------------------------
@jax.jit
def patch_merging(x, g2, b2, w2):
    """PatchMerging forward: x [B,H,W,C] -> [B, ceil(H/2), ceil(W/2), 2*C]."""
    B, H, W, C = x.shape
    pad_h, pad_w = H % 2, W % 2
    if pad_h or pad_w:
        x = jnp.pad(x, ((0, 0), (0, pad_h), (0, pad_w), (0, 0)))
    Hp, Wp = H + pad_h, W + pad_w
    Ho, Wo = Hp // 2, Wp // 2
    C2 = 2 * C
    Cout = w2.shape[-1]
    G = B * Ho
    n_rows = G * Wo

    # Free (contiguous) reshape: x5[g, t, wo, :] = [x[b, 2ho+t, 2wo, :] | x[b, 2ho+t, 2wo+1, :]]
    x5 = x.reshape(G, 2, Wo, C2)

    x_itemsize = jnp.dtype(x.dtype).itemsize
    out_itemsize = x_itemsize  # output in the activation dtype
    tg, vmem_limit = _derive_tiling(G, Wo, C, x_itemsize, out_itemsize)
    grid = (pl.cdiv(G, tg),)

    cost = pl.CostEstimate(
        flops=2 * n_rows * (4 * C) * Cout,
        transcendentals=n_rows,  # one rsqrt per merged output pixel
        bytes_accessed=(n_rows * 4 * C * x_itemsize          # read activations
                        + n_rows * Cout * out_itemsize       # write output
                        + 2 * C2 * Cout * 2                  # bf16 weight
                        + 2 * 2 * C2 * 4 * 2),               # gamma + beta
    )

    out2d = pl.pallas_call(
        _patch_merging_kernel,
        out_shape=jax.ShapeDtypeStruct((n_rows, Cout), x.dtype),
        grid=grid,
        in_specs=[
            pl.BlockSpec((tg, 2, Wo, C2), lambda i: (i, 0, 0, 0)),
            _const_block_spec((2, C2)),
            _const_block_spec((2, C2)),
            _const_block_spec((2, C2, Cout)),
        ],
        out_specs=pl.BlockSpec((tg * Wo, Cout), lambda i: (i, 0)),
        compiler_params=pltpu.CompilerParams(
            dimension_semantics=("parallel",),
            vmem_limit_bytes=vmem_limit),
        cost_estimate=cost,
    )(x5, g2, b2, w2)

    return out2d.reshape(B, Ho, Wo, Cout)


# ---------------------------------------------------------------------------
# Pure-JAX reference (matches the PyTorch module semantics)
# ---------------------------------------------------------------------------
def _patch_merging_pad(x):
    H, W, _ = x.shape[-3:]
    pad_h, pad_w = H % 2, W % 2
    if pad_h or pad_w:
        cfg = [(0, 0)] * (x.ndim - 3) + [(0, pad_h), (0, pad_w), (0, 0)]
        x = jnp.pad(x, cfg)
    x0 = x[..., 0::2, 0::2, :]
    x1 = x[..., 1::2, 0::2, :]
    x2 = x[..., 0::2, 1::2, :]
    x3 = x[..., 1::2, 1::2, :]
    return jnp.concatenate([x0, x1, x2, x3], axis=-1)


def _reference(x, gamma, beta, w_reduction):
    merged = _patch_merging_pad(x).astype(jnp.float32)
    mean = jnp.mean(merged, axis=-1, keepdims=True)
    var = jnp.mean((merged - mean) ** 2, axis=-1, keepdims=True)
    xn = (merged - mean) / jnp.sqrt(var + LN_EPS)
    xn = xn * gamma.astype(jnp.float32) + beta.astype(jnp.float32)
    return jnp.einsum("...k,ok->...o", xn, w_reduction.astype(jnp.float32))


# ---------------------------------------------------------------------------
# Self-test
# ---------------------------------------------------------------------------
def _run_case(key, B, H, W, dim, x_dtype, atol, rtol):
    k1, k2, k3, k4 = jax.random.split(key, 4)
    x = jax.random.normal(k1, (B, H, W, dim), dtype=jnp.float32).astype(x_dtype)
    gamma = 1.0 + 0.01 * jax.random.normal(k2, (4 * dim,), dtype=jnp.float32)
    beta = 0.01 * jax.random.normal(k3, (4 * dim,), dtype=jnp.float32)
    w_red = 0.05 * jax.random.normal(k4, (2 * dim, 4 * dim), dtype=jnp.float32)

    g2, b2, w2 = prepare_patch_merging_params(gamma, beta, w_red)  # init-time
    out = patch_merging(x, g2, b2, w2)
    jax.block_until_ready(out)

    ref = _reference(x.astype(jnp.float32), gamma, beta, w_red)
    Ho, Wo = (H + H % 2) // 2, (W + W % 2) // 2
    assert out.shape == (B, Ho, Wo, 2 * dim), out.shape
    assert out.dtype == x_dtype, out.dtype
    err = float(jnp.max(jnp.abs(out.astype(jnp.float32) - ref)))
    assert jnp.allclose(out.astype(jnp.float32), ref, atol=atol, rtol=rtol), err
    return err


if __name__ == "__main__":
    key = jax.random.PRNGKey(0)
    k_a, k_b, k_c = jax.random.split(key, 3)

    # 1) baseline f32 (even H/W, 2 grid steps)
    _run_case(k_a, B=2, H=16, W=16, dim=32, x_dtype=jnp.float32, atol=3e-2, rtol=3e-2)
    # 2) odd H/W -> padding path, and G not divisible by tg -> partial last block
    _run_case(k_b, B=1, H=13, W=15, dim=16, x_dtype=jnp.float32, atol=3e-2, rtol=3e-2)
    # 3) bf16 activations in/out (16-row sublane alignment path), 2 grid steps
    _run_case(k_c, B=2, H=16, W=32, dim=32, x_dtype=jnp.bfloat16, atol=8e-2, rtol=8e-2)

    print("KERNEL_OK")
</pallas_src>

<mosaic_0001>
module attributes {stable_mosaic.version = 11 : i64} {
  func.func @_patch_merging_kernel(%arg0: i32, %arg1: memref<8x2x8x64xf32, #tpu.memory_space<vmem>>, %arg2: memref<2x64xf32, #tpu.memory_space<vmem>>, %arg3: memref<2x64xf32, #tpu.memory_space<vmem>>, %arg4: memref<2x64x64xbf16, #tpu.memory_space<vmem>>, %arg5: memref<64x64xf32, #tpu.memory_space<vmem>>) attributes {dimension_semantics = [#tpu.dimension_semantics<parallel>], iteration_bounds = array<i64: 2>, scalar_prefetch = 0 : i64, scratch_operands = 0 : i64, tpu.core_type = #tpu.core_type<tc>, window_params = [{transform_indices = @transform_0, window_bounds = array<i64: 8, 2, 8, 64>}, {pipeline_mode = #tpu.pipeline_mode<synchronous>, transform_indices = @transform_1, window_bounds = array<i64: 2, 64>}, {pipeline_mode = #tpu.pipeline_mode<synchronous>, transform_indices = @transform_2, window_bounds = array<i64: 2, 64>}, {pipeline_mode = #tpu.pipeline_mode<synchronous>, transform_indices = @transform_3, window_bounds = array<i64: 2, 64, 64>}, {transform_indices = @transform_4, window_bounds = array<i64: 64, 64>}]} {
    %c0 = arith.constant 0 : index
    %c0_0 = arith.constant 0 : index
    %c0_1 = arith.constant 0 : index
    %c0_2 = arith.constant 0 : index
    %0 = vector.load %arg1[%c0, %c0_0, %c0_1, %c0_2] : memref<8x2x8x64xf32, #tpu.memory_space<vmem>>, vector<8x1x8x64xf32>
    %1 = vector.shape_cast %0 : vector<8x1x8x64xf32> to vector<8x8x64xf32>
    %cst = arith.constant dense<0.000000e+00> : vector<8x8xf32>
    %2 = vector.multi_reduction <add>, %1, %cst [2] : vector<8x8x64xf32> to vector<8x8xf32>
    %3 = vector.shape_cast %2 : vector<8x8xf32> to vector<8x8x1xf32>
    %c0_3 = arith.constant 0 : index
    %c1 = arith.constant 1 : index
    %c0_4 = arith.constant 0 : index
    %c0_5 = arith.constant 0 : index
    %4 = vector.load %arg1[%c0_3, %c1, %c0_4, %c0_5] : memref<8x2x8x64xf32, #tpu.memory_space<vmem>>, vector<8x1x8x64xf32>
    %5 = vector.shape_cast %4 : vector<8x1x8x64xf32> to vector<8x8x64xf32>
    %cst_6 = arith.constant dense<0.000000e+00> : vector<8x8xf32>
    %6 = vector.multi_reduction <add>, %5, %cst_6 [2] : vector<8x8x64xf32> to vector<8x8xf32>
    %7 = vector.shape_cast %6 : vector<8x8xf32> to vector<8x8x1xf32>
    %8 = arith.addf %3, %7 : vector<8x8x1xf32>
    %cst_7 = arith.constant 7.812500e-03 : f32
    %9 = vector.broadcast %cst_7 : f32 to vector<8x8x1xf32>
    %10 = arith.mulf %8, %9 : vector<8x8x1xf32>
    %c0_8 = arith.constant 0 : index
    %c0_9 = arith.constant 0 : index
    %c0_10 = arith.constant 0 : index
    %c0_11 = arith.constant 0 : index
    %11 = vector.load %arg1[%c0_8, %c0_9, %c0_10, %c0_11] : memref<8x2x8x64xf32, #tpu.memory_space<vmem>>, vector<8x1x8x64xf32>
    %12 = vector.shape_cast %11 : vector<8x1x8x64xf32> to vector<8x8x64xf32>
    %13 = vector.broadcast %10 : vector<8x8x1xf32> to vector<8x8x64xf32>
    %14 = arith.subf %12, %13 : vector<8x8x64xf32>
    %15 = arith.mulf %14, %14 : vector<8x8x64xf32>
    %cst_12 = arith.constant dense<0.000000e+00> : vector<8x8xf32>
    %16 = vector.multi_reduction <add>, %15, %cst_12 [2] : vector<8x8x64xf32> to vector<8x8xf32>
    %17 = vector.shape_cast %16 : vector<8x8xf32> to vector<8x8x1xf32>
    %c0_13 = arith.constant 0 : index
    %c1_14 = arith.constant 1 : index
    %c0_15 = arith.constant 0 : index
    %c0_16 = arith.constant 0 : index
    %18 = vector.load %arg1[%c0_13, %c1_14, %c0_15, %c0_16] : memref<8x2x8x64xf32, #tpu.memory_space<vmem>>, vector<8x1x8x64xf32>
    %19 = vector.shape_cast %18 : vector<8x1x8x64xf32> to vector<8x8x64xf32>
    %20 = vector.broadcast %10 : vector<8x8x1xf32> to vector<8x8x64xf32>
    %21 = arith.subf %19, %20 : vector<8x8x64xf32>
    %22 = arith.mulf %21, %21 : vector<8x8x64xf32>
    %cst_17 = arith.constant dense<0.000000e+00> : vector<8x8xf32>
    %23 = vector.multi_reduction <add>, %22, %cst_17 [2] : vector<8x8x64xf32> to vector<8x8xf32>
    %24 = vector.shape_cast %23 : vector<8x8xf32> to vector<8x8x1xf32>
    %25 = arith.addf %17, %24 : vector<8x8x1xf32>
    %cst_18 = arith.constant 7.812500e-03 : f32
    %26 = vector.broadcast %cst_18 : f32 to vector<8x8x1xf32>
    %27 = arith.mulf %25, %26 : vector<8x8x1xf32>
    %cst_19 = arith.constant 9.99999974E-6 : f32
    %28 = vector.broadcast %cst_19 : f32 to vector<8x8x1xf32>
    %29 = arith.addf %27, %28 : vector<8x8x1xf32>
    %30 = math.rsqrt %29 : vector<8x8x1xf32>
    %c0_20 = arith.constant 0 : index
    %c0_21 = arith.constant 0 : index
    %31 = vector.load %arg2[%c0_20, %c0_21] : memref<2x64xf32, #tpu.memory_space<vmem>>, vector<2x64xf32>
    %32 = vector.shape_cast %31 : vector<2x64xf32> to vector<2x1x1x64xf32>
    %c0_22 = arith.constant 0 : index
    %c0_23 = arith.constant 0 : index
    %33 = vector.load %arg3[%c0_22, %c0_23] : memref<2x64xf32, #tpu.memory_space<vmem>>, vector<2x64xf32>
    %34 = vector.shape_cast %33 : vector<2x64xf32> to vector<2x1x1x64xf32>
    %c0_24 = arith.constant 0 : index
    %c0_25 = arith.constant 0 : index
    %c0_26 = arith.constant 0 : index
    %c0_27 = arith.constant 0 : index
    %35 = vector.load %arg1[%c0_24, %c0_25, %c0_26, %c0_27] : memref<8x2x8x64xf32, #tpu.memory_space<vmem>>, vector<8x1x8x64xf32>
    %36 = vector.shape_cast %35 : vector<8x1x8x64xf32> to vector<8x8x64xf32>
    %37 = vector.broadcast %10 : vector<8x8x1xf32> to vector<8x8x64xf32>
    %38 = arith.subf %36, %37 : vector<8x8x64xf32>
    %39 = vector.broadcast %30 : vector<8x8x1xf32> to vector<8x8x64xf32>
    %40 = arith.mulf %38, %39 : vector<8x8x64xf32>
    %41 = vector.extract_strided_slice %32 {offsets = [0, 0, 0, 0], sizes = [1, 1, 1, 64], strides = [1, 1, 1, 1]} : vector<2x1x1x64xf32> to vector<1x1x1x64xf32>
    %42 = vector.shape_cast %41 : vector<1x1x1x64xf32> to vector<1x1x64xf32>
    %43 = vector.broadcast %42 : vector<1x1x64xf32> to vector<8x8x64xf32>
    %44 = arith.mulf %40, %43 : vector<8x8x64xf32>
    %45 = vector.extract_strided_slice %34 {offsets = [0, 0, 0, 0], sizes = [1, 1, 1, 64], strides = [1, 1, 1, 1]} : vector<2x1x1x64xf32> to vector<1x1x1x64xf32>
    %46 = vector.shape_cast %45 : vector<1x1x1x64xf32> to vector<1x1x64xf32>
    %47 = vector.broadcast %46 : vector<1x1x64xf32> to vector<8x8x64xf32>
    %48 = arith.addf %44, %47 : vector<8x8x64xf32>
    %49 = arith.truncf %48 : vector<8x8x64xf32> to vector<8x8x64xbf16>
    %50 = vector.shape_cast %49 : vector<8x8x64xbf16> to vector<64x64xbf16>
    %c0_28 = arith.constant 0 : index
    %c0_29 = arith.constant 0 : index
    %c0_30 = arith.constant 0 : index
    %51 = vector.load %arg4[%c0_28, %c0_29, %c0_30] : memref<2x64x64xbf16, #tpu.memory_space<vmem>>, vector<1x64x64xbf16>
    %52 = vector.shape_cast %51 : vector<1x64x64xbf16> to vector<64x64xbf16>
    %cst_31 = arith.constant dense<0.000000e+00> : vector<64x64xf32>
    %53 = tpu.matmul %50, %52, %cst_31 {dimension_numbers = #tpu.dot_dimension_numbers<[1], [0], [0], [1], [0, 0, 1, 1], [], []>} : vector<64x64xbf16>, vector<64x64xbf16>, vector<64x64xf32> -> vector<64x64xf32>
    %c0_32 = arith.constant 0 : index
    %c1_33 = arith.constant 1 : index
    %c0_34 = arith.constant 0 : index
    %c0_35 = arith.constant 0 : index
    %54 = vector.load %arg1[%c0_32, %c1_33, %c0_34, %c0_35] : memref<8x2x8x64xf32, #tpu.memory_space<vmem>>, vector<8x1x8x64xf32>
    %55 = vector.shape_cast %54 : vector<8x1x8x64xf32> to vector<8x8x64xf32>
    %56 = vector.broadcast %10 : vector<8x8x1xf32> to vector<8x8x64xf32>
    %57 = arith.subf %55, %56 : vector<8x8x64xf32>
    %58 = vector.broadcast %30 : vector<8x8x1xf32> to vector<8x8x64xf32>
    %59 = arith.mulf %57, %58 : vector<8x8x64xf32>
    %60 = vector.extract_strided_slice %32 {offsets = [1, 0, 0, 0], sizes = [1, 1, 1, 64], strides = [1, 1, 1, 1]} : vector<2x1x1x64xf32> to vector<1x1x1x64xf32>
    %61 = vector.shape_cast %60 : vector<1x1x1x64xf32> to vector<1x1x64xf32>
    %62 = vector.broadcast %61 : vector<1x1x64xf32> to vector<8x8x64xf32>
    %63 = arith.mulf %59, %62 : vector<8x8x64xf32>
    %64 = vector.extract_strided_slice %34 {offsets = [1, 0, 0, 0], sizes = [1, 1, 1, 64], strides = [1, 1, 1, 1]} : vector<2x1x1x64xf32> to vector<1x1x1x64xf32>
    %65 = vector.shape_cast %64 : vector<1x1x1x64xf32> to vector<1x1x64xf32>
    %66 = vector.broadcast %65 : vector<1x1x64xf32> to vector<8x8x64xf32>
    %67 = arith.addf %63, %66 : vector<8x8x64xf32>
    %68 = arith.truncf %67 : vector<8x8x64xf32> to vector<8x8x64xbf16>
    %69 = vector.shape_cast %68 : vector<8x8x64xbf16> to vector<64x64xbf16>
    %c1_36 = arith.constant 1 : index
    %c0_37 = arith.constant 0 : index
    %c0_38 = arith.constant 0 : index
    %70 = vector.load %arg4[%c1_36, %c0_37, %c0_38] : memref<2x64x64xbf16, #tpu.memory_space<vmem>>, vector<1x64x64xbf16>
    %71 = vector.shape_cast %70 : vector<1x64x64xbf16> to vector<64x64xbf16>
    %cst_39 = arith.constant dense<0.000000e+00> : vector<64x64xf32>
    %72 = tpu.matmul %69, %71, %cst_39 {dimension_numbers = #tpu.dot_dimension_numbers<[1], [0], [0], [1], [0, 0, 1, 1], [], []>} : vector<64x64xbf16>, vector<64x64xbf16>, vector<64x64xf32> -> vector<64x64xf32>
    %73 = arith.addf %53, %72 : vector<64x64xf32>
    %c0_40 = arith.constant 0 : index
    %c0_41 = arith.constant 0 : index
    %74 = vector.load %arg5[%c0_40, %c0_41] : memref<64x64xf32, #tpu.memory_space<vmem>>, vector<64x64xf32>
    tpu.vector_store %arg5[%c0_40, %c0_41], %73 {strides = array<i32>} : memref<64x64xf32, #tpu.memory_space<vmem>>, vector<64x64xf32>,
    return
  }
  func.func @transform_0(%arg0: i32) -> (i32, i32, i32, i32) {
    %c0_i32 = arith.constant 0 : i32
    %c0_i32_0 = arith.constant 0 : i32
    %c0_i32_1 = arith.constant 0 : i32
    %c0_i32_2 = arith.constant 0 : i32
    return %arg0, %c0_i32, %c0_i32_0, %c0_i32_1 : i32, i32, i32, i32
  }
  func.func @transform_1(%arg0: i32) -> (i32, i32) {
    %c0_i32 = arith.constant 0 : i32
    %c0_i32_0 = arith.constant 0 : i32
    %c0_i32_1 = arith.constant 0 : i32
    return %c0_i32, %c0_i32_0 : i32, i32
  }
  func.func @transform_2(%arg0: i32) -> (i32, i32) {
    %c0_i32 = arith.constant 0 : i32
    %c0_i32_0 = arith.constant 0 : i32
    %c0_i32_1 = arith.constant 0 : i32
    return %c0_i32, %c0_i32_0 : i32, i32
  }
  func.func @transform_3(%arg0: i32) -> (i32, i32, i32) {
    %c0_i32 = arith.constant 0 : i32
    %c0_i32_0 = arith.constant 0 : i32
    %c0_i32_1 = arith.constant 0 : i32
    %c0_i32_2 = arith.constant 0 : i32
    return %c0_i32, %c0_i32_0, %c0_i32_1 : i32, i32, i32
  }
  func.func @transform_4(%arg0: i32) -> (i32, i32) {
    %c0_i32 = arith.constant 0 : i32
    %c0_i32_0 = arith.constant 0 : i32
    return %arg0, %c0_i32 : i32, i32
  }
}

</mosaic_0001>

<bundles_post_ra>
// kernel: patch_merging.1
= control target key start
LH: loop header
LB: loop body
LE: loop exit
PB: predicated region body
PF: predicated region fallthrough
CT: control target
= control target key end

     0   :  { %9 = vsyncpa [#allocation3], 0  ;;  %s1437_s0 = inlined_call_operand.vmem [shape: f32[16,2,8,64], index: 0, kind: input, shape index: {}]   ;;  %s1438_s1 = inlined_call_operand.vmem [shape: f32[2,64], index: 1, kind: input, shape index: {}]   ;;  %s1439_s2 = inlined_call_operand.vmem [shape: f32[2,64], index: 2, kind: input, shape index: {}]   ;;  %s1440_s3 = inlined_call_operand.vmem [shape: bf16[2,64,64], index: 3, kind: input, shape index: {}]   ;;  %s1441_s4 = inlined_call_operand.hbm [shape: f32[128,64], index: 4, kind: output, shape index: {}]  }
   0x1   :  { %11 = vsyncpa [#allocation3 + $0x1], 0  ;;  %s1047_s15 = smov 0   ;;  %s1049_s16 = smov 0  }
   0x2   :  { %s1051_s17 = smov 0   ;;  %s1053_s18 = smov 0  }
   0x3 LB: > { %s1068_s19 = sadd.s32 4294967295, %s1018_s18   ;;  %s812_s20 = sadd.s32 4294967294, %s1018_s18   ;;  %s1018_s18 = sphi %s1053_s18, %s1447_s18   ;;  %s1014_s17 = sphi %s1051_s17, %s1446_s17   ;;  %s1010_s16 = sphi %s1049_s16, %s1445_s16   ;;  %s1006_s15 = sphi %s1047_s15, %s1444_s15  }
   0x4   : > { %s1072_s21 = sadd.s32 1, %s1018_s18   ;;  %s113_s22 = sadd.s32 1, %s1014_s17 }
   0x5   : > { %s110_s23 = ssub.s32 %s1018_s18, %s1072_s21  ;;  %p123_p0 = scmp.ne.s32.totalorder %s1014_s17, %s1010_s16 }
   0x6   : > { %p111_p1 = scmp.eq.s32.totalorder %s110_s23, 0  ;;  %p124_p2 = scmp.eq.s32.totalorder %s1068_s19, 1 }
   0x7   : > { %p129_p3 = scmp.ne.s32.totalorder %s1010_s16, %s1006_s15  ;;  %p130_p4 = scmp.eq.s32.totalorder %s812_s20, 1 }
   0x8   : > { %s1083_s24 = scalar_select %p111_p1, %s1014_s17, %s113_s22  }
   0x9   : > { %p1085_p5 = por %p124_p2, %p123_p0  ;;  %p1089_p6 = por %p130_p4, %p129_p3 }
   0xa   : > { %p815_p7 = scmp.ge.s32.totalorder %s1018_s18, 1  ;;  %p167_p8 = scmp.lt.s32.totalorder %s1018_s18, 3 }
   0xc   : > { %p168_p9 = pnand %p815_p7, %p167_p8 }
   0xd   : > { %s817_s27 = sshll.u32 (!%p168_p9), %s1068_s19, 3  ;;  %s191_s9 = sand.u32 (!%p168_p9), 1, %s1010_s16  }
   0xe   : > { %171 = sbr.rel (%p168_p9) target bundleno = 483 (0x1e3), region = 36  ;;  %p195_p10 = scmp.lt.s32.totalorder (!%p168_p9), %s817_s27, 15 }
   0xf   : > { %s816_s10 = sshll.u32 (!%p168_p9), %s191_s9, 6  ;;  %s890_s12 = sshll.u32 (!%p168_p9), %s1068_s19, 6 }
  0x10   : > { %s1385_s11 = scalar_lea.vmem (!%p168_p9), [#allocation2], %s816_s10  ;;  %s746_s20 = scalar_lea.hbm (!%p168_p9), %s1441_s4, %s890_s12 }
  0x11   : > { %s747_s22 = sshll.u32 (!%p168_p9), %s1385_s11, 4  ;;  %s749_s23 = sshll.u32 (!%p168_p9), %s746_s20, 4  ;;  %s748_s22 = int_to_ptr.vmem [resolvable:$true] %s747_s22  ;;  %s750_s23 = int_to_ptr.hbm [resolvable:$true] %s749_s23 }
  0x12   : > { %s735_s19 = scalar_lea.sflag (!%p168_p9), [#allocation3], %s191_s9 }
  0x13   : > { %s1449_s27 = smov (!%p195_p10, %s817_s27), 15  ;;  %vm211_vm0 = vcmask 523264  }
  0x14   : > { %s881_s28 = sshll.u32 %s1449_s27, 4  ;;  %s970_s27 = sshra.s32 %s750_s23, 4  ;;  %s971_s27 = int_to_ptr.hbm [resolvable:$true] %s970_s27 }
  0x15   : > { %s1099_s5 = scalar_lea.vmem %s1437_s0, %s881_s28  ;;  %s972_s28 = scalar_lea.hbm %s971_s27, 64 }
  0x16   : > { %v824_v0 = vld [vmem:[%s1099_s5 + $0x48] sm:$0xff]  ;;  %v207_v1 = vld [vmem:[%s1099_s5 + $0x40] sm:$0xff]  ;;  %v825_v6 = vld [vmem:[%s1099_s5 + $0x58] sm:$0xff]  ;;  %p973_p11 = scmp.ne.s32.totalorder %s971_s27, %s972_s28  ;;  %p977_p0 = scmp.lt.s32.totalorder %s971_s27, %s1441_s4 }
  0x17   : > { %v1104_v2 = vld [vmem:[%s1099_s5] sm:$0xff]  ;;  %v257_v3 = vsel %vm211_vm0, %v824_v0, 0.0  ;;  %v224_v4 = vsel %vm211_vm0, %v207_v1, 0.0  ;;  %v208_v7 = vld [vmem:[%s1099_s5 + $0x50] sm:$0xff]  ;;  %v260_v9 = vsel %vm211_vm0, %v825_v6, 0.0  ;;  %v1120_v12 = vld [vmem:[%s1099_s5 + $0x18] sm:$0xff] }
  0x18   : > { %v212_v5 = vsel %vm211_vm0, %v1104_v2, 0.0  ;;  %258 = vadd.xlane.f32.xlu1 %v257_v3  ;;  %225 = vadd.xlane.f32.xlu0 %v224_v4  ;;  %v1113_v8 = vld [vmem:[%s1099_s5 + $0x10] sm:$0xff]  ;;  %v227_v10 = vsel %vm211_vm0, %v208_v7, 0.0  ;;  %v1123_v13 = vld [vmem:[%s1099_s5 + $0x8] sm:$0xff]  ;;  %v1126_v14 = vld [vmem:[%s1099_s5 + $0x60] sm:$0xff]  ;;  %v248_v15 = vsel %vm211_vm0, %v1120_v12, 0.0  ;;  %p974_p12 = pnand %p973_p11, %p1085_p5 }
  0x19   : > { %213 = vadd.xlane.f32.xlu2 %v212_v5  ;;  %v215_v11 = vsel %vm211_vm0, %v1113_v8, 0.0  ;;  %v245_v16 = vsel %vm211_vm0, %v1123_v13, 0.0  ;;  %v230_v17 = vsel %vm211_vm0, %v1126_v14, 0.0  ;;  %v1135_v18 = vld [vmem:[%s1099_s5 + $0x68] sm:$0xff]  ;;  %v1138_v19 = vld [vmem:[%s1099_s5 + $0x70] sm:$0xff]  ;;  %v1141_v20 = vld [vmem:[%s1099_s5 + $0x78] sm:$0xff] }
  0x1a   : > { %v263_v21 = vsel %vm211_vm0, %v1135_v18, 0.0  ;;  %v233_v22 = vsel %vm211_vm0, %v1138_v19, 0.0  ;;  %v266_v23 = vsel %vm211_vm0, %v1141_v20, 0.0  ;;  %v1150_v24 = vld [vmem:[%s1099_s5 + $0x20] sm:$0xff]  ;;  %v1153_v25 = vld [vmem:[%s1099_s5 + $0x30] sm:$0xff]  ;;  %v1156_v26 = vld [vmem:[%s1099_s5 + $0x28] sm:$0xff]  ;;  %p975_p13 = pneg %p974_p12 }
  0x1b   : > { %v218_v27 = vsel %vm211_vm0, %v1150_v24, 0.0  ;;  %v221_v28 = vsel %vm211_vm0, %v1153_v25, 0.0  ;;  %v251_v29 = vsel %vm211_vm0, %v1156_v26, 0.0  ;;  %v1165_v30 = vld [vmem:[%s1099_s5 + $0x38] sm:$0xff]  ;;  %s976_s5 = scalar_lea.hbm %s1441_s4, 128 }
  0x1c   : > { %v254_v31 = vsel %vm211_vm0, %v1165_v30, 0.0  ;;  %p978_p1 = scmp.lt.s32.totalorder %s976_s5, %s972_s28 }
  0x1e   : > { %p979_p2 = por %p978_p1, %p977_p0 }
  0x20   : > { %261 = vadd.xlane.f32.xlu1 %v260_v9  ;;  %228 = vadd.xlane.f32.xlu0 %v227_v10  ;;  %p980_p3 = pnand %p979_p2, %p975_p13 }
  0x21   : > { %216 = vadd.xlane.f32.xlu2 %v215_v11 }
  0x28   : > { %249 = vadd.xlane.f32.xlu1 %v248_v15  ;;  %246 = vadd.xlane.f32.xlu0 %v245_v16 }
  0x29   : > { %231 = vadd.xlane.f32.xlu2 %v230_v17 }
  0x30   : > { %264 = vadd.xlane.f32.xlu1 %v263_v21  ;;  %234 = vadd.xlane.f32.xlu0 %v233_v22 }
  0x31   : > { %267 = vadd.xlane.f32.xlu2 %v266_v23 }
  0x38   : > { %219 = vadd.xlane.f32.xlu0 %v218_v27  ;;  %222 = vadd.xlane.f32.xlu1 %v221_v28 }
  0x39   : > { %252 = vadd.xlane.f32.xlu2 %v251_v29 }
  0x40   : > { %255 = vadd.xlane.f32.xlu0 %v254_v31 }
  0x8b   : > { %v259_v32 = vpop.xlane.xlu1 %258  ;;  %v226_v33 = vpop.xlane.xlu0 %225 }
  0x8c   : > { %v273_v34 = vadd.f32 %v259_v32, %v226_v33  ;;  %v214_v35 = vpop.xlane.xlu2 %213 }
  0x8e   : > { %v281_v36 = vmul.f32 0.0078125, %v273_v34 }
  0x90   : > { %v1169_v37 = vsub.f32 %v207_v1, %v281_v36  ;;  %v1171_v38 = vsub.f32 %v824_v0, %v281_v36 }
  0x92   : > { %v297_v39 = vmul.f32 %v1169_v37, %v1169_v37  ;;  %v337_v40 = vmul.f32 %v1171_v38, %v1171_v38 }
  0x93   : > { %v262_v41 = vpop.xlane.xlu1 %261  ;;  %v229_v42 = vpop.xlane.xlu0 %228 }
  0x94   : > { %v274_v43 = vadd.f32 %v262_v41, %v229_v42  ;;  %v217_v44 = vpop.xlane.xlu2 %216  ;;  %v313_v45 = vsel %vm211_vm0, %v297_v39, 0.0  ;;  %v353_v46 = vsel %vm211_vm0, %v337_v40, 0.0 }
  0x95   : > { %314 = vadd.xlane.f32.xlu1 %v313_v45  ;;  %354 = vadd.xlane.f32.xlu0 %v353_v46 }
  0x96   : > { %v282_v47 = vmul.f32 0.0078125, %v274_v43 }
  0x98   : > { %v1179_v48 = vsub.f32 %v208_v7, %v282_v47  ;;  %v1181_v49 = vsub.f32 %v825_v6, %v282_v47 }
  0x9a   : > { %v338_v50 = vmul.f32 %v1181_v49, %v1181_v49  ;;  %v298_v51 = vmul.f32 %v1179_v48, %v1179_v48 }
  0x9b   : > { %v250_v52 = vpop.xlane.xlu1 %249  ;;  %v247_v53 = vpop.xlane.xlu0 %246 }
  0x9c   : > { %v270_v54 = vadd.f32 %v250_v52, %v217_v44  ;;  %v269_v55 = vadd.f32 %v247_v53, %v214_v35  ;;  %v232_v56 = vpop.xlane.xlu2 %231  ;;  %v356_v57 = vsel %vm211_vm0, %v338_v50, 0.0  ;;  %v316_v58 = vsel %vm211_vm0, %v298_v51, 0.0  ;;  %v885_v53 = vld [vmem:[%s1440_s3 + $0x18] sm:$0xff] }
  0x9d   : > { %357 = vadd.xlane.f32.xlu1 %v356_v57  ;;  %317 = vadd.xlane.f32.xlu2 %v316_v58  ;;  %v888_v57 = vld [vmem:[%s1440_s3 + $0x30] sm:$0xff] }
  0x9e   : > { %v278_v59 = vmul.f32 0.0078125, %v270_v54  ;;  %v277_v60 = vmul.f32 0.0078125, %v269_v55  ;;  %895 = vmatpush.bf16.msra.mxu3 %v885_v53  ;;  %701 = vmatpush.bf16.msra.mxu1 %v885_v53  ;;  %v884_v58 = vld [vmem:[%s1440_s3 + $0x10] sm:$0xff] }
  0xa0   : > { %v1190_v61 = vsub.f32 %v1113_v8, %v278_v59  ;;  %v1193_v62 = vsub.f32 %v1104_v2, %v277_v60  ;;  %v1196_v63 = vsub.f32 %v1123_v13, %v277_v60  ;;  %v1205_v4 = vsub.f32 %v1120_v12, %v278_v59 }
  0xa2   : > { %v333_v0 = vmul.f32 %v1196_v63, %v1196_v63  ;;  %v293_v1 = vmul.f32 %v1193_v62, %v1193_v62  ;;  %v294_v3 = vmul.f32 %v1190_v61, %v1190_v61  ;;  %v334_v12 = vmul.f32 %v1205_v4, %v1205_v4  ;;  %896 = vmatpush.bf16.msra.mxu3 %v884_v58 }
  0xa3   : > { %v265_v5 = vpop.xlane.xlu1 %264  ;;  %v235_v6 = vpop.xlane.xlu0 %234  ;;  %702 = vmatpush.bf16.msra.mxu1 %v884_v58 }
  0xa4   : > { %v275_v7 = vadd.f32 %v265_v5, %v232_v56  ;;  %v268_v2 = vpop.xlane.xlu2 %267  ;;  %v341_v8 = vsel %vm211_vm0, %v333_v0, 0.0  ;;  %v301_v9 = vsel %vm211_vm0, %v293_v1, 0.0  ;;  %v304_v10 = vsel %vm211_vm0, %v294_v3, 0.0  ;;  %v887_v0 = vld [vmem:[%s1440_s3 + $0x28] sm:$0xff] }
  0xa5   : > { %v276_v11 = vadd.f32 %v268_v2, %v235_v6  ;;  %342 = vadd.xlane.f32.xlu1 %v341_v8  ;;  %302 = vadd.xlane.f32.xlu2 %v301_v9  ;;  %v883_v1 = vld [vmem:[%s1440_s3 + $0x8] sm:$0xff]  ;;  %v886_v2 = vld [vmem:[%s1440_s3 + $0x20] sm:$0xff] }
  0xa6   : > { %v283_v13 = vmul.f32 0.0078125, %v275_v7  ;;  %305 = vadd.xlane.f32.xlu0 %v304_v10  ;;  %897 = vmatpush.bf16.msra.mxu3 %v883_v1  ;;  %v882_v8 = vld [vmem:[%s1440_s3] sm:$0xff] }
  0xa7   : > { %v284_v15 = vmul.f32 0.0078125, %v276_v11  ;;  %703 = vmatpush.bf16.msra.mxu1 %v883_v1 }
  0xa8   : > { %v1211_v16 = vsub.f32 %v1126_v14, %v283_v13  ;;  %v1223_v27 = vsub.f32 %v1135_v18, %v283_v13  ;;  %v344_v14 = vsel %vm211_vm0, %v334_v12, 0.0 }
  0xa9   : > { %v1216_v17 = vsub.f32 %v1138_v19, %v284_v15  ;;  %v1228_v31 = vsub.f32 %v1141_v20, %v284_v15 }
  0xaa   : > { %v299_v21 = vmul.f32 %v1211_v16, %v1211_v16  ;;  %v339_v34 = vmul.f32 %v1223_v27, %v1223_v27  ;;  %898 = vmatpush.bf16.msra.mxu3 %v882_v8 }
  0xab   : > { %v220_v22 = vpop.xlane.xlu0 %219  ;;  %v300_v23 = vmul.f32 %v1216_v17, %v1216_v17  ;;  %v223_v35 = vpop.xlane.xlu1 %222  ;;  %v340_v36 = vmul.f32 %v1228_v31, %v1228_v31  ;;  %704 = vmatpush.bf16.msra.mxu1 %v882_v8 }
  0xac   : > { %v253_v28 = vpop.xlane.xlu2 %252  ;;  %v319_v29 = vsel %vm211_vm0, %v299_v21, 0.0  ;;  %v359_v41 = vsel %vm211_vm0, %v339_v34, 0.0 }
  0xad   : > { %v271_v19 = vadd.f32 %v253_v28, %v220_v22  ;;  %345 = vadd.xlane.f32.xlu2 %v344_v14  ;;  %v322_v32 = vsel %vm211_vm0, %v300_v23, 0.0  ;;  %v362_v43 = vsel %vm211_vm0, %v340_v36, 0.0 }
  0xae   : > { %320 = vadd.xlane.f32.xlu0 %v319_v29  ;;  %323 = vadd.xlane.f32.xlu1 %v322_v32  ;;  %v469_v29 = vld [vmem:[%s1438_s1] sm:$0x3] }
  0xaf   : > { %v279_v33 = vmul.f32 0.0078125, %v271_v19 }
  0xb1   : > { %v1234_v18 = vsub.f32 %v1150_v24, %v279_v33  ;;  %v1242_v42 = vsub.f32 %v1156_v26, %v279_v33 }
  0xb3   : > { %v256_v39 = vpop.xlane.xlu0 %255  ;;  %v295_v20 = vmul.f32 %v1234_v18, %v1234_v18  ;;  %v335_v47 = vmul.f32 %v1242_v42, %v1242_v42 }
  0xb4   : > { %v272_v40 = vadd.f32 %v256_v39, %v223_v35  ;;  %v1288_v35 = vperm.slane %v469_v29, 1 }
  0xb5   : > { %360 = vadd.xlane.f32.xlu2 %v359_v41  ;;  %v307_v24 = vsel %vm211_vm0, %v295_v20, 0.0  ;;  %v1293_v41 = vperm.slane %v469_v29, 0 }
  0xb6   : > { %v280_v44 = vmul.f32 0.0078125, %v272_v40  ;;  %363 = vadd.xlane.f32.xlu0 %v362_v43  ;;  %308 = vadd.xlane.f32.xlu1 %v307_v24  ;;  %v470_v40 = vld [vmem:[%s1439_s2] sm:$0x3] }
  0xb8   : > { %v1247_v45 = vsub.f32 %v1153_v25, %v280_v44  ;;  %v1250_v46 = vsub.f32 %v1165_v30, %v280_v44  ;;  %v347_v25 = vsel %vm211_vm0, %v335_v47, 0.0  ;;  %v889_v30 = vld [vmem:[%s1440_s3 + $0x38] sm:$0xff] }
  0xb9   : > { %891 = vmatpush.bf16.msra.mxu2 %v889_v30  ;;  %616 = vmatpush.bf16.msra.mxu0 %v889_v30 }
  0xba   : > { %v296_v26 = vmul.f32 %v1247_v45, %v1247_v45  ;;  %v336_v50 = vmul.f32 %v1250_v46, %v1250_v46 }
  0xbc   : > { %v310_v51 = vsel %vm211_vm0, %v296_v26, 0.0  ;;  %v350_v52 = vsel %vm211_vm0, %v336_v50, 0.0 }
  0xbd   : > { %311 = vadd.xlane.f32.xlu2 %v310_v51  ;;  %892 = vmatpush.bf16.msra.mxu2 %v888_v57 }
  0xbe   : > { %348 = vadd.xlane.f32.xlu0 %v347_v25  ;;  %351 = vadd.xlane.f32.xlu1 %v350_v52  ;;  %v1298_v25 = vperm.slane %v470_v40, 1 }
  0xbf   : > { %617 = vmatpush.bf16.msra.mxu0 %v888_v57 }
  0xc1   : > { %893 = vmatpush.bf16.msra.mxu2 %v887_v0 }
  0xc3   : > { %618 = vmatpush.bf16.msra.mxu0 %v887_v0 }
  0xc5   : > { %894 = vmatpush.bf16.msra.mxu2 %v886_v2 }
  0xc7   : > { %619 = vmatpush.bf16.msra.mxu0 %v886_v2 }
 0x108   : > { %v315_v54 = vpop.xlane.xlu1 %314  ;;  %v355_v55 = vpop.xlane.xlu0 %354 }
 0x109   : > { %v369_v56 = vadd.f32 %v355_v55, %v315_v54  ;;  %v1301_v54 = vperm.slane %v470_v40, 0 }
 0x10b   : > { %v377_v59 = vmul.f32 0.0078125, %v369_v56 }
 0x10d   : > { %v385_v60 = vadd.f32 1e-05, %v377_v59 }
 0x10f   : > { %940 = vrsqrt.f32 %v385_v60  ;;  %vm435_vm2 = vweird.f32 %v385_v60 }
 0x110   : > { %v358_v3 = vpop.xlane.xlu1 %357  ;;  %v318_v5 = vpop.xlane.xlu2 %317 }
 0x111   : > { %v370_v6 = vadd.f32 %v358_v3, %v318_v5 }
 0x113   : > { %v378_v7 = vmul.f32 0.0078125, %v370_v6 }
 0x115   : > { %v941_v9 = vpop.eup %940  ;;  %v386_v10 = vadd.f32 1e-05, %v378_v7 }
 0x116   : > { %v430_v11 = vmul.f32 %v941_v9, %v385_v60  ;;  %vm436_vm1 = vweird.f32 %v941_v9 }
 0x117   : > { %942 = vrsqrt.f32 %v386_v10  ;;  %vm437_vm3 = vmor %vm435_vm2, %vm436_vm1  ;;  %vm445_vm5 = vweird.f32 %v386_v10 }
 0x118   : > { %v431_v13 = vmul.f32 %v941_v9, %v430_v11  ;;  %v343_v15 = vpop.xlane.xlu1 %342  ;;  %v303_v12 = vpop.xlane.xlu2 %302 }
 0x119   : > { %v306_v21 = vpop.xlane.xlu0 %305  ;;  %v365_v22 = vadd.f32 %v343_v15, %v303_v12 }
 0x11a   : > { %v432_v23 = vmul.f32 0.5, %v431_v13 }
 0x11b   : > { %v373_v28 = vmul.f32 0.0078125, %v365_v22 }
 0x11c   : > { %v433_v14 = vsub.f32 1.5, %v432_v23 }
 0x11d   : > { %v943_v19 = vpop.eup %942  ;;  %v381_v32 = vadd.f32 1e-05, %v373_v28 }
 0x11e   : > { %v434_v33 = vmul.f32 %v941_v9, %v433_v14  ;;  %v440_v34 = vmul.f32 %v943_v19, %v386_v10  ;;  %vm446_vm4 = vweird.f32 %v943_v19 }
 0x11f   : > { %944 = vrsqrt.f32 %v381_v32  ;;  %vm447_vm6 = vmor %vm445_vm5, %vm446_vm4  ;;  %vm395_vm8 = vweird.f32 %v381_v32 }
 0x120   : > { %v438_v36 = vsel %vm437_vm3, %v941_v9, %v434_v33  ;;  %v441_v39 = vmul.f32 %v943_v19, %v440_v34  ;;  %v346_v20 = vpop.xlane.xlu2 %345 }
 0x121   : > { %v475_v43 = vmul.f32 %v438_v36, %v1169_v37  ;;  %v517_v24 = vmul.f32 %v438_v36, %v1171_v38  ;;  %v321_v44 = vpop.xlane.xlu0 %320  ;;  %v324_v47 = vpop.xlane.xlu1 %323  ;;  %v366_v26 = vadd.f32 %v346_v20, %v306_v21 }
 0x122   : > { %v442_v50 = vmul.f32 0.5, %v441_v39 }
 0x123   : > { %v374_v51 = vmul.f32 0.0078125, %v366_v26  ;;  %v526_v52 = vmul.f32 %v1288_v35, %v517_v24  ;;  %v484_v53 = vmul.f32 %v1293_v41, %v475_v43 }
 0x124   : > { %v443_v30 = vsub.f32 1.5, %v442_v50 }
 0x125   : > { %v945_v55 = vpop.eup %944  ;;  %v1303_v56 = vadd.f32 1e-05, %v374_v51  ;;  %v535_v57 = vadd.f32 %v1298_v25, %v526_v52  ;;  %v493_v0 = vadd.f32 %v1301_v54, %v484_v53 }
 0x126   : > { %v444_v37 = vmul.f32 %v943_v19, %v443_v30  ;;  %v390_v38 = vmul.f32 %v945_v55, %v381_v32  ;;  %vm396_vm7 = vweird.f32 %v945_v55 }
 0x127   : > { %946 = vrsqrt.f32 %v1303_v56  ;;  %v543_v11 = vpack.c.bf16 %v535_v57, %v535_v57  ;;  %v501_v21 = vpack.c.bf16 %v493_v0, %v493_v0  ;;  %vm397_vm9 = vmor %vm395_vm8, %vm396_vm7  ;;  %vm405_vm11 = vweird.f32 %v1303_v56 }
 0x128   : > { %v448_v58 = vsel %vm447_vm6, %v943_v19, %v444_v37  ;;  %v391_v59 = vmul.f32 %v945_v55, %v390_v38  ;;  %v361_v60 = vpop.xlane.xlu2 %360 }
 0x129   : > { %v476_v1 = vmul.f32 %v448_v58, %v1179_v48  ;;  %v518_v3 = vmul.f32 %v448_v58, %v1181_v49  ;;  %v364_v5 = vpop.xlane.xlu0 %363  ;;  %v309_v6 = vpop.xlane.xlu1 %308  ;;  %v371_v7 = vadd.f32 %v361_v60, %v321_v44  ;;  %v568_v33 = vunpack.c.l.b16 %v543_v11 }
 0x12a   : > { %v392_v2 = vmul.f32 0.5, %v391_v59  ;;  %v372_v8 = vadd.f32 %v364_v5, %v324_v47  ;;  %v653_v40 = vunpack.c.l.b16 %v501_v21 }
 0x12b   : > { %v379_v9 = vmul.f32 0.0078125, %v371_v7  ;;  %v527_v10 = vmul.f32 %v1288_v35, %v518_v3  ;;  %v485_v13 = vmul.f32 %v1293_v41, %v476_v1 }
 0x12c   : > { %v393_v15 = vsub.f32 1.5, %v392_v2  ;;  %v380_v12 = vmul.f32 0.0078125, %v372_v8 }
 0x12d   : > { %v947_v22 = vpop.eup %946  ;;  %v1312_v23 = vadd.f32 1e-05, %v379_v9  ;;  %v536_v48 = vadd.f32 %v1298_v25, %v527_v10  ;;  %v494_v49 = vadd.f32 %v1301_v54, %v485_v13 }
 0x12e   : > { %v394_v28 = vmul.f32 %v945_v55, %v393_v15  ;;  %v400_v14 = vmul.f32 %v947_v22, %v1303_v56  ;;  %v1317_v29 = vadd.f32 1e-05, %v380_v12  ;;  %vm406_vm10 = vweird.f32 %v947_v22 }
 0x12f   : > { %948 = vrsqrt.f32 %v1312_v23  ;;  %v544_v19 = vpack.c.bf16 %v536_v48, %v536_v48  ;;  %v502_v34 = vpack.c.bf16 %v494_v49, %v494_v49  ;;  %vm407_vm12 = vmor %vm405_vm11, %vm406_vm10  ;;  %vm455_vm1 = vweird.f32 %v1312_v23 }
 0x130   : > { %v398_v36 = vsel %vm397_vm9, %v945_v55, %v394_v28  ;;  %v401_v39 = vmul.f32 %v947_v22, %v400_v14  ;;  %950 = vrsqrt.f32 %v1317_v29  ;;  %v312_v20 = vpop.xlane.xlu2 %311  ;;  %vm465_vm15 = vweird.f32 %v1317_v29 }
 0x131   : > { %v471_v43 = vmul.f32 %v398_v36, %v1193_v62  ;;  %v513_v32 = vmul.f32 %v398_v36, %v1196_v63  ;;  %v349_v24 = vpop.xlane.xlu0 %348  ;;  %v352_v44 = vpop.xlane.xlu1 %351  ;;  %v569_v47 = vunpack.c.l.b16 %v544_v19  ;;  %v654_v26 = vunpack.c.l.b16 %v502_v34 }
 0x132   : > { %v402_v50 = vmul.f32 0.5, %v401_v39  ;;  %v367_v51 = vadd.f32 %v349_v24, %v309_v6  ;;  %v368_v52 = vadd.f32 %v352_v44, %v312_v20 }
 0x133   : > { %v574_v30 = vpack.c.b16 %v569_v47, %v568_v33  ;;  %v659_v53 = vpack.c.b16 %v654_v26, %v653_v40  ;;  %v522_v55 = vmul.f32 %v1288_v35, %v513_v32  ;;  %v480_v37 = vmul.f32 %v1293_v41, %v471_v43 }
 0x134   : > { %v403_v38 = vsub.f32 1.5, %v402_v50  ;;  %v375_v57 = vmul.f32 0.0078125, %v367_v51  ;;  %v376_v58 = vmul.f32 0.0078125, %v368_v52 }
 0x135   : > { %v949_v62 = vpop.eup %948  ;;  %854 = vmatmul.msk.bf16.vlgmr.msra.gmra.mxu2 %vm211_vm0, %v574_v30  ;;  %874 = vmatmul.msk.bf16.vlgmr.msra.gmra.mxu3 %vm211_vm0, %v659_v53  ;;  %v531_v1 = vadd.f32 %v1298_v25, %v522_v55  ;;  %v489_v6 = vadd.f32 %v1301_v54, %v480_v37 }
 0x136   : > { %v951_v63 = vpop.eup %950  ;;  %v404_v59 = vmul.f32 %v947_v22, %v403_v38  ;;  %v450_v60 = vmul.f32 %v949_v62, %v1312_v23  ;;  %v1329_v0 = vadd.f32 1e-05, %v375_v57  ;;  %v1333_v5 = vadd.f32 1e-05, %v376_v58 }
 0x137   : > { %v460_v3 = vmul.f32 %v951_v63, %v1317_v29  ;;  %v539_v11 = vpack.c.bf16 %v531_v1, %v531_v1  ;;  %v497_v21 = vpack.c.bf16 %v489_v6, %v489_v6  ;;  %vm456_vm13 = vweird.f32 %v949_v62 }
 0x138   : > { %v408_v56 = vsel %vm407_vm12, %v947_v22, %v404_v59  ;;  %v451_v7 = vmul.f32 %v949_v62, %v450_v60  ;;  %952 = vrsqrt.f32 %v1329_v0  ;;  %vm466_vm14 = vweird.f32 %v951_v63  ;;  %vm457_vm2 = vmor %vm455_vm1, %vm456_vm13 }
 0x139   : > { %v472_v2 = vmul.f32 %v408_v56, %v1190_v61  ;;  %v514_v8 = vmul.f32 %v408_v56, %v1205_v4  ;;  %v461_v9 = vmul.f32 %v951_v63, %v460_v3  ;;  %954 = vrsqrt.f32 %v1333_v5  ;;  %vm467_vm3 = vmor %vm465_vm15, %vm466_vm14 }
 0x13a   : > { %v452_v10 = vmul.f32 0.5, %v451_v7  ;;  %v564_v14 = vunpack.c.l.b16 %v539_v11  ;;  %v649_v39 = vunpack.c.l.b16 %v497_v21  ;;  %vm415_vm6 = vweird.f32 %v1329_v0 }
 0x13b   : > { %v462_v13 = vmul.f32 0.5, %v461_v9  ;;  %v523_v15 = vmul.f32 %v1288_v35, %v514_v8  ;;  %v481_v12 = vmul.f32 %v1293_v41, %v472_v2  ;;  %vm425_vm8 = vweird.f32 %v1333_v5 }
 0x13c   : > { %v453_v48 = vsub.f32 1.5, %v452_v10 }
 0x13d   : > { %v463_v22 = vsub.f32 1.5, %v462_v13  ;;  %v532_v49 = vadd.f32 %v1298_v25, %v523_v15  ;;  %v490_v61 = vadd.f32 %v1301_v54, %v481_v12 }
 0x13e   : > { %v953_v4 = vpop.eup %952  ;;  %v454_v28 = vmul.f32 %v949_v62, %v453_v48 }
 0x13f   : > { %v955_v19 = vpop.eup %954  ;;  %v464_v33 = vmul.f32 %v951_v63, %v463_v22  ;;  %v410_v34 = vmul.f32 %v953_v4, %v1329_v0  ;;  %v540_v36 = vpack.c.bf16 %v532_v49, %v532_v49  ;;  %vm416_vm4 = vweird.f32 %v953_v4 }
 0x140   : > { %v458_v20 = vsel %vm457_vm2, %v949_v62, %v454_v28  ;;  %v420_v40 = vmul.f32 %v955_v19, %v1333_v5  ;;  %v498_v43 = vpack.c.bf16 %v490_v61, %v490_v61  ;;  %vm426_vm5 = vweird.f32 %v955_v19  ;;  %vm417_vm7 = vmor %vm415_vm6, %vm416_vm4 }
 0x141   : > { %v468_v32 = vsel %vm467_vm3, %v951_v63, %v464_v33  ;;  %v477_v29 = vmul.f32 %v458_v20, %v1211_v16  ;;  %v519_v24 = vmul.f32 %v458_v20, %v1223_v27  ;;  %v411_v23 = vmul.f32 %v953_v4, %v410_v34  ;;  %vm427_vm9 = vmor %vm425_vm8, %vm426_vm5 }
 0x142   : > { %v478_v44 = vmul.f32 %v468_v32, %v1216_v17  ;;  %v520_v47 = vmul.f32 %v468_v32, %v1228_v31  ;;  %v421_v26 = vmul.f32 %v955_v19, %v420_v40  ;;  %v565_v50 = vunpack.c.l.b16 %v540_v36 }
 0x143   : > { %v412_v51 = vmul.f32 0.5, %v411_v23  ;;  %v650_v52 = vunpack.c.l.b16 %v498_v43  ;;  %v528_v30 = vmul.f32 %v1288_v35, %v519_v24  ;;  %v486_v53 = vmul.f32 %v1293_v41, %v477_v29 }
 0x144   : > { %v422_v55 = vmul.f32 0.5, %v421_v26  ;;  %v572_v37 = vpack.c.b16 %v565_v50, %v564_v14  ;;  %v529_v38 = vmul.f32 %v1288_v35, %v520_v47  ;;  %v487_v16 = vmul.f32 %v1293_v41, %v478_v44 }
 0x145   : > { %v413_v27 = vsub.f32 1.5, %v412_v51  ;;  %v657_v57 = vpack.c.b16 %v650_v52, %v649_v39  ;;  %v537_v17 = vadd.f32 %v1298_v25, %v528_v30  ;;  %v495_v31 = vadd.f32 %v1301_v54, %v486_v53 }
 0x146   : > { %v423_v58 = vsub.f32 1.5, %v422_v55  ;;  %852 = vmatmul.msk.bf16.vlgmr.msra.gmra.mxu0 %vm211_vm0, %v572_v37  ;;  %v538_v62 = vadd.f32 %v1298_v25, %v529_v38  ;;  %v496_v63 = vadd.f32 %v1301_v54, %v487_v16 }
 0x147   : > { %v414_v59 = vmul.f32 %v953_v4, %v413_v27  ;;  %872 = vmatmul.msk.bf16.vlgmr.msra.gmra.mxu1 %vm211_vm0, %v657_v57  ;;  %v545_v60 = vpack.c.bf16 %v537_v17, %v537_v17  ;;  %v503_v1 = vpack.c.bf16 %v495_v31, %v495_v31 }
 0x148   : > { %v424_v3 = vmul.f32 %v955_v19, %v423_v58  ;;  %v546_v6 = vpack.c.bf16 %v538_v62, %v538_v62  ;;  %v504_v56 = vpack.c.bf16 %v496_v63, %v496_v63 }
 0x149   : > { %v418_v7 = vsel %vm417_vm7, %v953_v4, %v414_v59  ;;  %v570_v2 = vunpack.c.l.b16 %v545_v60  ;;  %v655_v8 = vunpack.c.l.b16 %v503_v1 }
 0x14a   : > { %v473_v9 = vmul.f32 %v418_v7, %v1234_v18  ;;  %v515_v0 = vmul.f32 %v418_v7, %v1242_v42  ;;  %v428_v10 = vsel %vm427_vm9, %v955_v19, %v424_v3  ;;  %v571_v11 = vunpack.c.l.b16 %v546_v6 }
 0x14b   : > { %v474_v13 = vmul.f32 %v428_v10, %v1247_v45  ;;  %v516_v15 = vmul.f32 %v428_v10, %v1250_v46  ;;  %v656_v12 = vunpack.c.l.b16 %v504_v56 }
 0x14c   : > { %v575_v21 = vpack.c.b16 %v571_v11, %v570_v2  ;;  %v524_v5 = vmul.f32 %v1288_v35, %v515_v0  ;;  %v482_v48 = vmul.f32 %v1293_v41, %v473_v9 }
 0x14d   : > { %v660_v22 = vpack.c.b16 %v656_v12, %v655_v8  ;;  %v525_v49 = vmul.f32 %v1288_v35, %v516_v15  ;;  %v483_v61 = vmul.f32 %v1293_v41, %v474_v13 }
 0x14e   : > { %855 = vmatmul.msk.bf16.gmra.mxu2 %vm211_vm0, %v575_v21  ;;  %v533_v18 = vadd.f32 %v1298_v25, %v524_v5  ;;  %v491_v42 = vadd.f32 %v1301_v54, %v482_v48 }
 0x14f   : > { %875 = vmatmul.msk.bf16.gmra.mxu3 %vm211_vm0, %v660_v22  ;;  %v534_v45 = vadd.f32 %v1298_v25, %v525_v49  ;;  %v492_v46 = vadd.f32 %v1301_v54, %v483_v61 }
 0x150   : > { %v541_v4 = vpack.c.bf16 %v533_v18, %v533_v18  ;;  %v499_v28 = vpack.c.bf16 %v491_v42, %v491_v42 }
 0x151   : > { %v542_v14 = vpack.c.bf16 %v534_v45, %v534_v45  ;;  %v500_v35 = vpack.c.bf16 %v492_v46, %v492_v46 }
 0x152   : > { %v566_v19 = vunpack.c.l.b16 %v541_v4  ;;  %v651_v41 = vunpack.c.l.b16 %v499_v28 }
 0x153   : > { %v567_v33 = vunpack.c.l.b16 %v542_v14  ;;  %v652_v34 = vunpack.c.l.b16 %v500_v35 }
 0x155   : > { %v573_v36 = vpack.c.b16 %v567_v33, %v566_v19  ;;  %v658_v39 = vpack.c.b16 %v652_v34, %v651_v41 }
 0x157   : > { %853 = vmatmul.msk.bf16.gmra.mxu0 %vm211_vm0, %v573_v36  ;;  %873 = vmatmul.msk.bf16.gmra.mxu1 %vm211_vm0, %v658_v39 }
 0x1b8   : > { %v631_v25 = vpop.f32.mrf.mxu2  ;;  %v716_v20 = vpop.f32.mrf.mxu3 }
 0x1b9   : > { %v717_v54 = vadd.f32 %v716_v20, %v631_v25 }
 0x1bb   : > { %730 = vst.msk [vmem:[%s1385_s11 + $0x20] sm:$0xff] %vm211_vm0, %v717_v54 }
 0x1c0   : > { %v633_v40 = vpop.f32.mrf.mxu2  ;;  %v718_v43 = vpop.f32.mrf.mxu3 }
 0x1c1   : > { %v719_v32 = vadd.f32 %v718_v43, %v633_v40 }
 0x1c3   : > { %731 = vst.msk [vmem:[%s1385_s11 + $0x28] sm:$0xff] %vm211_vm0, %v719_v32  ;;  %v621_v29 = vpop.f32.mrf.mxu0 }
 0x1c4   : > { %v706_v24 = vpop.f32.mrf.mxu1 }
 0x1c5   : > { %v707_v23 = vadd.f32 %v706_v24, %v621_v29 }
 0x1c7   : > { %726 = vst.msk [vmem:[%s1385_s11] sm:$0xff] %vm211_vm0, %v707_v23 }
 0x1cb   : > { %v623_v44 = vpop.f32.mrf.mxu0 }
 0x1cc   : > { %v708_v47 = vpop.f32.mrf.mxu1 }
 0x1cd   : > { %v709_v26 = vadd.f32 %v708_v47, %v623_v44 }
 0x1cf   : > { %727 = vst.msk [vmem:[%s1385_s11 + $0x8] sm:$0xff] %vm211_vm0, %v709_v26 }
 0x1d1   : > { %v636_v50 = vpop.f32.mrf.mxu2 }
 0x1d2   : > { %v721_v51 = vpop.f32.mrf.mxu3 }
 0x1d3   : > { %v722_v52 = vadd.f32 %v721_v51, %v636_v50 }
 0x1d4   : > { %v626_v30 = vpop.f32.mrf.mxu0  ;;  %v711_v53 = vpop.f32.mrf.mxu1 }
 0x1d5   : > { %732 = vst.msk [vmem:[%s1385_s11 + $0x30] sm:$0xff] %vm211_vm0, %v722_v52  ;;  %v712_v55 = vadd.f32 %v711_v53, %v626_v30 }
 0x1d7   : > { %728 = vst.msk [vmem:[%s1385_s11 + $0x10] sm:$0xff] %vm211_vm0, %v712_v55 }
 0x1d9   : > { %v638_v37 = vpop.f32.mrf.mxu2 }
 0x1da   : > { %v723_v38 = vpop.f32.mrf.mxu3 }
 0x1db   : > { %v724_v16 = vadd.f32 %v723_v38, %v638_v37 }
 0x1dc   : > { %v628_v27 = vpop.f32.mrf.mxu0  ;;  %v713_v57 = vpop.f32.mrf.mxu1 }
 0x1dd   : > { %733 = vst.msk [vmem:[%s1385_s11 + $0x38] sm:$0xff] %vm211_vm0, %v724_v16  ;;  %v714_v17 = vadd.f32 %v713_v57, %v628_v27 }
 0x1df   : > { %729 = vst.msk [vmem:[%s1385_s11 + $0x18] sm:$0xff] %vm211_vm0, %v714_v17 }
 0x1e0   : > { %983 = shalt.err (!%p980_p3)
}
 0x1e1   : > { %s1020_s8 = smov 128   ;;  %s1021_s9 = smov 8  }
 0x1e2   : > { %899 = dma.vmem_to_hbm [thread:$0]  (%p1085_p5), %s748_s22, 1024, %s750_s23, %s735_s19, %s1020_s8, %s1020_s8, %s1021_s9  }
 0x1e3 PF: > { %p905_p4 = scmp.ge.s32.totalorder %s1018_s18, 2  ;;  %s764_s10 = sand.u32 1, %s1006_s15  }
 0x1e4   : > { %s765_s11 = scalar_lea.sflag [#allocation3], %s764_s10 }
 0x1e5   : > { %p902_p7 = pnand %p905_p4, %p1089_p6 }
 0x1e7   : > { %p903_p8 = pneg %p902_p7 }
 0x1e9   : > { %1001 = dma.done.wait (%p903_p8), %s765_s11, 1024  }
 0x1ea   : > { %1003 = vsyncadd (%p903_p8), %s765_s11, 4294966272  ;;  %p14_p9 = scmp.ge.s32.totalorder %s1072_s21, 4   ;;  %s1444_s15 = smov %s1010_s16 }
 0x1eb   : > { %s1445_s16 = smov %s1014_s17  ;;  %s1446_s17 = smov %s1083_s24 }
 0x1ec   : > { %s1447_s18 = smov %s1072_s21  ;;  %16 = sbr.rel (!%p14_p9) target bundleno = 3 (0x3), region = 73 }
 0x1f1   :  { %771 = vsyncpa [#allocation3], 1 }
 0x1f2   :  { %773 = vsyncpa [#allocation3 + $0x1], 1 }

</bundles_post_ra>
